<compile_context>
chip_gen: v7x
topology: tpu7x:2x2x1
jax: 0.10.0
libtpu: 0.0.40
codegen_flags: <defaults>
</compile_context>

<pallas_src>
import jax
import jax.numpy as jnp
from jax.experimental import pallas as pl
from jax.experimental.pallas import tpu as pltpu

SUB = 8  # rows per inner accumulator sub-block (vreg sublane count)


# ----------------------------------------------------------------------------
# Optimized path: stride == 1, "same" output (Ho == H, Wo == W), lane-dense W*C
# ----------------------------------------------------------------------------
def _make_same_kernel(KH, KW, pad, H, WC, C, x_dtype):
    Ho = H
    n_full = Ho // SUB
    rem = Ho % SUB
    # sub-blocks whose tap windows are guaranteed fully inside [0, H)
    first_int = min(-(-pad // SUB), n_full)                     # ceil(pad / SUB)
    last_int_excl = min(max((H - pad) // SUB, first_int), n_full)
    shifts = [(-(kw - pad) * C) % WC for kw in range(KW)]       # static lane rolls

    def mac(rows_list, w_ref, bias, sz):
        # rows_list[kh]: (sz, WC) input rows for vertical tap kh (zero where padded)
        acc = jnp.broadcast_to(bias, (sz, WC))                  # f32
        for kh in range(KH):
            rows = rows_list[kh]
            for kw in range(KW):
                # edge-masked, pre-tiled weight row; broadcast over sz rows
                wrow = w_ref[pl.ds(kh * KW + kw, 1), :]         # (1, WC)
                if shifts[kw] == 0:
                    patch = rows
                else:
                    patch = pltpu.roll(rows, shifts[kw], axis=1)  # XLU lane rotate
                acc = acc + patch * wrow                        # mul in x dtype, f32 acc
        return acc

    def kernel(x_ref, w_ref, b_ref, o_ref):
        # x_ref: (H, WC) full image  w_ref: (KH*KW, WC)  b_ref: (1, WC) f32
        # o_ref: (H, WC)
        bias = b_ref[...]                                       # (1, WC) f32

        def boundary_block(h0, sz):
            # fully static zero-fill of the <= pad out-of-bounds rows
            rows_list = []
            for kh in range(KH):
                gs = h0 + kh - pad
                lo, hi = max(gs, 0), min(gs + sz, H)
                parts = []
                if lo > gs:
                    parts.append(jnp.zeros((lo - gs, WC), x_dtype))
                if hi > lo:
                    parts.append(x_ref[pl.ds(lo, hi - lo), :])
                if gs + sz > hi:
                    parts.append(jnp.zeros((gs + sz - hi, WC), x_dtype))
                rows_list.append(parts[0] if len(parts) == 1
                                 else jnp.concatenate(parts, axis=0))
            o_ref[pl.ds(h0, sz), :] = mac(rows_list, w_ref, bias, sz).astype(o_ref.dtype)

        # top / bottom boundary sub-blocks + remainder rows (static unroll)
        for s in list(range(0, first_int)) + list(range(last_int_excl, n_full)):
            boundary_block(s * SUB, SUB)
        if rem:
            boundary_block(n_full * SUB, rem)

        # interior sub-blocks: windows always in-bounds -> direct dynamic reads
        if last_int_excl > first_int:
            def body(s, carry):
                h0 = pl.multiple_of(s * SUB, SUB)
                rows_list = [x_ref[pl.ds(h0 + kh - pad, SUB), :] for kh in range(KH)]
                o_ref[pl.ds(h0, SUB), :] = (
                    mac(rows_list, w_ref, bias, SUB).astype(o_ref.dtype))
                return carry
            jax.lax.fori_loop(first_int, last_int_excl, body, 0)

    return kernel


def _dwconv2d_same(x, w, b, *, padding):
    B, H, W, C = x.shape
    KH, KW, _ = w.shape
    WC = W * C

    x2 = x.reshape(B, H, WC)                                    # lane-dense, free reshape

    # Pre-tile weights across W with the horizontal zero-padding folded in:
    # lanes whose shifted column (w + kw - pad) falls off the image get weight 0,
    # so the in-kernel roll needs no masks / selects.
    wpos = jnp.arange(W)
    rows = []
    for kh in range(KH):
        for kw in range(KW):
            dw = kw - padding
            valid = jnp.logical_and(wpos + dw >= 0, wpos + dw < W)        # (W,)
            rows.append(jnp.where(valid[:, None], w[kh, kw, :][None, :], 0.0)
                        .reshape(WC))
    w_t = jnp.stack(rows, axis=0).astype(x.dtype)                         # (KH*KW, WC)
    b_t = jnp.tile(b[None, :], (W, 1)).reshape(1, WC).astype(jnp.float32)  # (1, WC)

    kernel = _make_same_kernel(KH, KW, padding, H, WC, C, x.dtype)

    # VMEM sizing from actual buffers (input + output double-buffered, + weights).
    dsize = jnp.dtype(x.dtype).itemsize
    vmem_need = (2 * 2 * H * WC * dsize                 # in + out, double-buffered
                 + 2 * (KH * KW * WC * dsize + WC * 4))  # weights + bias
    vmem_limit = int(min(max(4 * vmem_need, 16 << 20), 56 << 20))  # < v7x 64 MiB phys

    out2 = pl.pallas_call(
        kernel,
        out_shape=jax.ShapeDtypeStruct((B, H, WC), x.dtype),
        grid=(B,),
        in_specs=[
            pl.BlockSpec((None, H, WC), lambda bi: (bi, 0, 0)),      # full image / batch
            pl.BlockSpec((KH * KW, WC), lambda bi: (0, 0)),
            pl.BlockSpec((1, WC), lambda bi: (0, 0)),
        ],
        out_specs=pl.BlockSpec((None, H, WC), lambda bi: (bi, 0, 0)),
        compiler_params=pltpu.CompilerParams(
            dimension_semantics=("parallel",),      # megacore split along B only
            vmem_limit_bytes=vmem_limit,
        ),
    )(x2, w_t, b_t)

    return out2.reshape(B, H, W, C)


# ----------------------------------------------------------------------------
# General fallback (stride != 1, non-"same", or image too large for VMEM)
# ----------------------------------------------------------------------------
def _dwconv2d_general(x, w, b, *, stride, padding, Ho, Wo):
    # TODO(synk): general-stride path is not lane-dense / row-tiled; only the
    # stride-1 "same" path (the module's configuration) is optimized.
    B, H, W, C = x.shape
    KH, KW, _ = w.shape
    Hp, Wp = H + 2 * padding, W + 2 * padding
    xp = jnp.pad(x, ((0, 0), (padding, padding), (padding, padding), (0, 0)))
    b2 = b.reshape(1, C)

    def kernel(x_ref, w_ref, b_ref, o_ref):
        xv = x_ref[...]
        wv = w_ref[...].astype(jnp.float32)
        acc = jnp.broadcast_to(b_ref[0, :].astype(jnp.float32), (Ho, Wo, C))
        for kh in range(KH):
            for kw in range(KW):
                patch = jax.lax.slice(
                    xv, (kh, kw, 0),
                    (kh + (Ho - 1) * stride + 1, kw + (Wo - 1) * stride + 1, C),
                    (stride, stride, 1)).astype(jnp.float32)
                acc = acc + patch * wv[kh, kw, :]
        o_ref[...] = acc.astype(o_ref.dtype)

    return pl.pallas_call(
        kernel,
        out_shape=jax.ShapeDtypeStruct((B, Ho, Wo, C), x.dtype),
        grid=(B,),
        in_specs=[
            pl.BlockSpec((None, Hp, Wp, C), lambda bi: (bi, 0, 0, 0)),
            pl.BlockSpec((KH, KW, C), lambda bi: (0, 0, 0)),
            pl.BlockSpec((1, C), lambda bi: (0, 0)),
        ],
        out_specs=pl.BlockSpec((None, Ho, Wo, C), lambda bi: (bi, 0, 0, 0)),
        compiler_params=pltpu.CompilerParams(dimension_semantics=("parallel",)),
    )(xp, w, b2)


# ----------------------------------------------------------------------------
# Public wrapper (matches nn.Conv2d(dim, dim, k, stride, padding, groups=dim))
# ----------------------------------------------------------------------------
def dwconv2d(x, w, b, *, stride, padding):
    """Depthwise conv. x: (B,H,W,C), w: (KH,KW,C), b: (C,). Returns (B,Ho,Wo,C)."""
    B, H, W, C = x.shape
    KH, KW, _ = w.shape
    Hp, Wp = H + 2 * padding, W + 2 * padding
    Ho = (Hp - KH) // stride + 1
    Wo = (Wp - KW) // stride + 1

    WC = W * C
    dsize = jnp.dtype(x.dtype).itemsize
    fits_vmem = 2 * 2 * H * WC * dsize + (KH * KW + 1) * WC * 8 <= 24 * 1024 * 1024

    if stride == 1 and Ho == H and Wo == W and WC % 128 == 0 and fits_vmem:
        return _dwconv2d_same(x, w, b, padding=padding)
    return _dwconv2d_general(x, w, b, stride=stride, padding=padding, Ho=Ho, Wo=Wo)


def reference_dwconv2d(x, w, b, *, stride, padding):
    """Pure-JAX reference matching nn.Conv2d(dim, dim, k, s, p, groups=dim)."""
    B, H, W, C = x.shape
    x_nchw = jnp.transpose(x, (0, 3, 1, 2))
    w_oihw = jnp.transpose(w, (2, 0, 1))[:, None, :, :]
    out = jax.lax.conv_general_dilated(
        x_nchw, w_oihw,
        window_strides=(stride, stride),
        padding=((padding, padding), (padding, padding)),
        dimension_numbers=("NCHW", "OIHW", "NCHW"),
        feature_group_count=C,
    )
    out = out + b[None, :, None, None]
    return jnp.transpose(out, (0, 2, 3, 1))


if __name__ == "__main__":
    # Module config: DWConv2d(dim=32, kernel_size=3, stride=1, padding=1)
    dim, kernel_size, stride, padding = 32, 3, 1, 1

    key = jax.random.PRNGKey(0)
    kx, kw_, kb = jax.random.split(key, 3)

    fan_in = kernel_size * kernel_size  # in_channels/groups * k * k
    bound = 1.0 / (fan_in ** 0.5)
    w = jax.random.uniform(kw_, (kernel_size, kernel_size, dim),
                           minval=-bound, maxval=bound, dtype=jnp.float32)
    b = jax.random.uniform(kb, (dim,), minval=-bound, maxval=bound,
                           dtype=jnp.float32)

    # Primary check: B=2, 16x16x32 (two static boundary sub-blocks per image).
    x = jax.random.normal(kx, (2, 16, 16, dim), dtype=jnp.float32)
    out = jax.block_until_ready(dwconv2d(x, w, b, stride=stride, padding=padding))
    ref = reference_dwconv2d(x, w, b, stride=stride, padding=padding)
    assert out.shape == ref.shape == (2, 16, 16, dim)
    assert jnp.allclose(out, ref, atol=1e-5, rtol=1e-5), "mismatch vs reference (16x16)"

    # Secondary check: 24x24 image exercises the interior fori_loop sub-block path.
    x24 = jax.random.normal(kx, (1, 24, 24, dim), dtype=jnp.float32)
    out24 = jax.block_until_ready(dwconv2d(x24, w, b, stride=stride, padding=padding))
    ref24 = reference_dwconv2d(x24, w, b, stride=stride, padding=padding)
    assert jnp.allclose(out24, ref24, atol=1e-5, rtol=1e-5), "mismatch vs reference (24x24)"

    print("KERNEL_OK")
</pallas_src>

<mosaic_0001>
module attributes {stable_mosaic.version = 11 : i64} {
  func.func @kernel(%arg0: i32, %arg1: memref<1x16x512xf32, #tpu.memory_space<vmem>>, %arg2: memref<9x512xf32, #tpu.memory_space<vmem>>, %arg3: memref<1x512xf32, #tpu.memory_space<vmem>>, %arg4: memref<1x16x512xf32, #tpu.memory_space<vmem>>) attributes {dimension_semantics = [#tpu.dimension_semantics<parallel>], iteration_bounds = array<i64: 2>, scalar_prefetch = 0 : i64, scratch_operands = 0 : i64, tpu.core_type = #tpu.core_type<tc>, window_params = [{transform_indices = @transform_0, window_bounds = array<i64: 1, 16, 512>}, {pipeline_mode = #tpu.pipeline_mode<synchronous>, transform_indices = @transform_1, window_bounds = array<i64: 9, 512>}, {pipeline_mode = #tpu.pipeline_mode<synchronous>, transform_indices = @transform_2, window_bounds = array<i64: 1, 512>}, {transform_indices = @transform_3, window_bounds = array<i64: 1, 16, 512>}]} {
    %c0 = arith.constant 0 : index
    %c0_0 = arith.constant 0 : index
    %0 = vector.load %arg3[%c0, %c0_0] : memref<1x512xf32, #tpu.memory_space<vmem>>, vector<1x512xf32>
    %cst = arith.constant 0.000000e+00 : f32
    %1 = vector.broadcast %cst : f32 to vector<1x512xf32>
    %c0_1 = arith.constant 0 : index
    %c0_2 = arith.constant 0 : index
    %c0_3 = arith.constant 0 : index
    %2 = vector.load %arg1[%c0_1, %c0_2, %c0_3] : memref<1x16x512xf32, #tpu.memory_space<vmem>>, vector<1x7x512xf32>
    %3 = vector.shape_cast %2 : vector<1x7x512xf32> to vector<7x512xf32>
    %4 = tpu.concatenate %1, %3 in 0 : vector<1x512xf32>, vector<7x512xf32> -> vector<8x512xf32>
    %c0_4 = arith.constant 0 : index
    %c0_5 = arith.constant 0 : index
    %c0_6 = arith.constant 0 : index
    %5 = vector.load %arg1[%c0_4, %c0_5, %c0_6] : memref<1x16x512xf32, #tpu.memory_space<vmem>>, vector<1x8x512xf32>
    %6 = vector.shape_cast %5 : vector<1x8x512xf32> to vector<8x512xf32>
    %c0_7 = arith.constant 0 : index
    %c1 = arith.constant 1 : index
    %c0_8 = arith.constant 0 : index
    %7 = vector.load %arg1[%c0_7, %c1, %c0_8] : memref<1x16x512xf32, #tpu.memory_space<vmem>>, vector<1x8x512xf32>
    %8 = vector.shape_cast %7 : vector<1x8x512xf32> to vector<8x512xf32>
    %9 = vector.shape_cast %0 : vector<1x512xf32> to vector<1x512xf32>
    %10 = vector.broadcast %9 : vector<1x512xf32> to vector<8x512xf32>
    %c0_9 = arith.constant 0 : index
    %c0_10 = arith.constant 0 : index
    %11 = vector.load %arg2[%c0_9, %c0_10] : memref<9x512xf32, #tpu.memory_space<vmem>>, vector<1x512xf32>
    %c32_i32 = arith.constant 32 : i32
    %12 = tpu.dynamic_rotate %4 by %c32_i32 dim 1 : vector<8x512xf32>, i32 -> vector<8x512xf32>
    %13 = vector.broadcast %11 : vector<1x512xf32> to vector<8x512xf32>
    %14 = arith.mulf %12, %13 : vector<8x512xf32>
    %15 = arith.addf %10, %14 : vector<8x512xf32>
    %c1_11 = arith.constant 1 : index
    %c0_12 = arith.constant 0 : index
    %16 = vector.load %arg2[%c1_11, %c0_12] : memref<9x512xf32, #tpu.memory_space<vmem>>, vector<1x512xf32>
    %17 = vector.broadcast %16 : vector<1x512xf32> to vector<8x512xf32>
    %18 = arith.mulf %4, %17 : vector<8x512xf32>
    %19 = arith.addf %15, %18 : vector<8x512xf32>
    %c2 = arith.constant 2 : index
    %c0_13 = arith.constant 0 : index
    %20 = vector.load %arg2[%c2, %c0_13] : memref<9x512xf32, #tpu.memory_space<vmem>>, vector<1x512xf32>
    %c480_i32 = arith.constant 480 : i32
    %21 = tpu.dynamic_rotate %4 by %c480_i32 dim 1 : vector<8x512xf32>, i32 -> vector<8x512xf32>
    %22 = vector.broadcast %20 : vector<1x512xf32> to vector<8x512xf32>
    %23 = arith.mulf %21, %22 : vector<8x512xf32>
    %24 = arith.addf %19, %23 : vector<8x512xf32>
    %c3 = arith.constant 3 : index
    %c0_14 = arith.constant 0 : index
    %25 = vector.load %arg2[%c3, %c0_14] : memref<9x512xf32, #tpu.memory_space<vmem>>, vector<1x512xf32>
    %c32_i32_15 = arith.constant 32 : i32
    %26 = tpu.dynamic_rotate %6 by %c32_i32_15 dim 1 : vector<8x512xf32>, i32 -> vector<8x512xf32>
    %27 = vector.broadcast %25 : vector<1x512xf32> to vector<8x512xf32>
    %28 = arith.mulf %26, %27 : vector<8x512xf32>
    %29 = arith.addf %24, %28 : vector<8x512xf32>
    %c4 = arith.constant 4 : index
    %c0_16 = arith.constant 0 : index
    %30 = vector.load %arg2[%c4, %c0_16] : memref<9x512xf32, #tpu.memory_space<vmem>>, vector<1x512xf32>
    %31 = vector.broadcast %30 : vector<1x512xf32> to vector<8x512xf32>
    %32 = arith.mulf %6, %31 : vector<8x512xf32>
    %33 = arith.addf %29, %32 : vector<8x512xf32>
    %c5 = arith.constant 5 : index
    %c0_17 = arith.constant 0 : index
    %34 = vector.load %arg2[%c5, %c0_17] : memref<9x512xf32, #tpu.memory_space<vmem>>, vector<1x512xf32>
    %c480_i32_18 = arith.constant 480 : i32
    %35 = tpu.dynamic_rotate %6 by %c480_i32_18 dim 1 : vector<8x512xf32>, i32 -> vector<8x512xf32>
    %36 = vector.broadcast %34 : vector<1x512xf32> to vector<8x512xf32>
    %37 = arith.mulf %35, %36 : vector<8x512xf32>
    %38 = arith.addf %33, %37 : vector<8x512xf32>
    %c6 = arith.constant 6 : index
    %c0_19 = arith.constant 0 : index
    %39 = vector.load %arg2[%c6, %c0_19] : memref<9x512xf32, #tpu.memory_space<vmem>>, vector<1x512xf32>
    %c32_i32_20 = arith.constant 32 : i32
    %40 = tpu.dynamic_rotate %8 by %c32_i32_20 dim 1 : vector<8x512xf32>, i32 -> vector<8x512xf32>
    %41 = vector.broadcast %39 : vector<1x512xf32> to vector<8x512xf32>
    %42 = arith.mulf %40, %41 : vector<8x512xf32>
    %43 = arith.addf %38, %42 : vector<8x512xf32>
    %c7 = arith.constant 7 : index
    %c0_21 = arith.constant 0 : index
    %44 = vector.load %arg2[%c7, %c0_21] : memref<9x512xf32, #tpu.memory_space<vmem>>, vector<1x512xf32>
    %45 = vector.broadcast %44 : vector<1x512xf32> to vector<8x512xf32>
    %46 = arith.mulf %8, %45 : vector<8x512xf32>
    %47 = arith.addf %43, %46 : vector<8x512xf32>
    %c8 = arith.constant 8 : index
    %c0_22 = arith.constant 0 : index
    %48 = vector.load %arg2[%c8, %c0_22] : memref<9x512xf32, #tpu.memory_space<vmem>>, vector<1x512xf32>
    %c480_i32_23 = arith.constant 480 : i32
    %49 = tpu.dynamic_rotate %8 by %c480_i32_23 dim 1 : vector<8x512xf32>, i32 -> vector<8x512xf32>
    %50 = vector.broadcast %48 : vector<1x512xf32> to vector<8x512xf32>
    %51 = arith.mulf %49, %50 : vector<8x512xf32>
    %52 = arith.addf %47, %51 : vector<8x512xf32>
    %c0_24 = arith.constant 0 : index
    %c0_25 = arith.constant 0 : index
    %c0_26 = arith.constant 0 : index
    %53 = vector.load %arg4[%c0_24, %c0_25, %c0_26] : memref<1x16x512xf32, #tpu.memory_space<vmem>>, vector<1x8x512xf32>
    %54 = vector.shape_cast %53 : vector<1x8x512xf32> to vector<8x512xf32>
    %55 = vector.shape_cast %52 : vector<8x512xf32> to vector<1x8x512xf32>
    tpu.vector_store %arg4[%c0_24, %c0_25, %c0_26], %55 {strides = array<i32>} : memref<1x16x512xf32, #tpu.memory_space<vmem>>, vector<1x8x512xf32>,
    %c0_27 = arith.constant 0 : index
    %c7_28 = arith.constant 7 : index
    %c0_29 = arith.constant 0 : index
    %56 = vector.load %arg1[%c0_27, %c7_28, %c0_29] : memref<1x16x512xf32, #tpu.memory_space<vmem>>, vector<1x8x512xf32>
    %57 = vector.shape_cast %56 : vector<1x8x512xf32> to vector<8x512xf32>
    %c0_30 = arith.constant 0 : index
    %c8_31 = arith.constant 8 : index
    %c0_32 = arith.constant 0 : index
    %58 = vector.load %arg1[%c0_30, %c8_31, %c0_32] : memref<1x16x512xf32, #tpu.memory_space<vmem>>, vector<1x8x512xf32>
    %59 = vector.shape_cast %58 : vector<1x8x512xf32> to vector<8x512xf32>
    %c0_33 = arith.constant 0 : index
    %c9 = arith.constant 9 : index
    %c0_34 = arith.constant 0 : index
    %60 = vector.load %arg1[%c0_33, %c9, %c0_34] : memref<1x16x512xf32, #tpu.memory_space<vmem>>, vector<1x7x512xf32>
    %61 = vector.shape_cast %60 : vector<1x7x512xf32> to vector<7x512xf32>
    %cst_35 = arith.constant 0.000000e+00 : f32
    %62 = vector.broadcast %cst_35 : f32 to vector<1x512xf32>
    %63 = tpu.concatenate %61, %62 in 0 : vector<7x512xf32>, vector<1x512xf32> -> vector<8x512xf32>
    %64 = vector.shape_cast %0 : vector<1x512xf32> to vector<1x512xf32>
    %65 = vector.broadcast %64 : vector<1x512xf32> to vector<8x512xf32>
    %c0_36 = arith.constant 0 : index
    %c0_37 = arith.constant 0 : index
    %66 = vector.load %arg2[%c0_36, %c0_37] : memref<9x512xf32, #tpu.memory_space<vmem>>, vector<1x512xf32>
    %c32_i32_38 = arith.constant 32 : i32
    %67 = tpu.dynamic_rotate %57 by %c32_i32_38 dim 1 : vector<8x512xf32>, i32 -> vector<8x512xf32>
    %68 = vector.broadcast %66 : vector<1x512xf32> to vector<8x512xf32>
    %69 = arith.mulf %67, %68 : vector<8x512xf32>
    %70 = arith.addf %65, %69 : vector<8x512xf32>
    %c1_39 = arith.constant 1 : index
    %c0_40 = arith.constant 0 : index
    %71 = vector.load %arg2[%c1_39, %c0_40] : memref<9x512xf32, #tpu.memory_space<vmem>>, vector<1x512xf32>
    %72 = vector.broadcast %71 : vector<1x512xf32> to vector<8x512xf32>
    %73 = arith.mulf %57, %72 : vector<8x512xf32>
    %74 = arith.addf %70, %73 : vector<8x512xf32>
    %c2_41 = arith.constant 2 : index
    %c0_42 = arith.constant 0 : index
    %75 = vector.load %arg2[%c2_41, %c0_42] : memref<9x512xf32, #tpu.memory_space<vmem>>, vector<1x512xf32>
    %c480_i32_43 = arith.constant 480 : i32
    %76 = tpu.dynamic_rotate %57 by %c480_i32_43 dim 1 : vector<8x512xf32>, i32 -> vector<8x512xf32>
    %77 = vector.broadcast %75 : vector<1x512xf32> to vector<8x512xf32>
    %78 = arith.mulf %76, %77 : vector<8x512xf32>
    %79 = arith.addf %74, %78 : vector<8x512xf32>
    %c3_44 = arith.constant 3 : index
    %c0_45 = arith.constant 0 : index
    %80 = vector.load %arg2[%c3_44, %c0_45] : memref<9x512xf32, #tpu.memory_space<vmem>>, vector<1x512xf32>
    %c32_i32_46 = arith.constant 32 : i32
    %81 = tpu.dynamic_rotate %59 by %c32_i32_46 dim 1 : vector<8x512xf32>, i32 -> vector<8x512xf32>
    %82 = vector.broadcast %80 : vector<1x512xf32> to vector<8x512xf32>
    %83 = arith.mulf %81, %82 : vector<8x512xf32>
    %84 = arith.addf %79, %83 : vector<8x512xf32>
    %c4_47 = arith.constant 4 : index
    %c0_48 = arith.constant 0 : index
    %85 = vector.load %arg2[%c4_47, %c0_48] : memref<9x512xf32, #tpu.memory_space<vmem>>, vector<1x512xf32>
    %86 = vector.broadcast %85 : vector<1x512xf32> to vector<8x512xf32>
    %87 = arith.mulf %59, %86 : vector<8x512xf32>
    %88 = arith.addf %84, %87 : vector<8x512xf32>
    %c5_49 = arith.constant 5 : index
    %c0_50 = arith.constant 0 : index
    %89 = vector.load %arg2[%c5_49, %c0_50] : memref<9x512xf32, #tpu.memory_space<vmem>>, vector<1x512xf32>
    %c480_i32_51 = arith.constant 480 : i32
    %90 = tpu.dynamic_rotate %59 by %c480_i32_51 dim 1 : vector<8x512xf32>, i32 -> vector<8x512xf32>
    %91 = vector.broadcast %89 : vector<1x512xf32> to vector<8x512xf32>
    %92 = arith.mulf %90, %91 : vector<8x512xf32>
    %93 = arith.addf %88, %92 : vector<8x512xf32>
    %c6_52 = arith.constant 6 : index
    %c0_53 = arith.constant 0 : index
    %94 = vector.load %arg2[%c6_52, %c0_53] : memref<9x512xf32, #tpu.memory_space<vmem>>, vector<1x512xf32>
    %c32_i32_54 = arith.constant 32 : i32
    %95 = tpu.dynamic_rotate %63 by %c32_i32_54 dim 1 : vector<8x512xf32>, i32 -> vector<8x512xf32>
    %96 = vector.broadcast %94 : vector<1x512xf32> to vector<8x512xf32>
    %97 = arith.mulf %95, %96 : vector<8x512xf32>
    %98 = arith.addf %93, %97 : vector<8x512xf32>
    %c7_55 = arith.constant 7 : index
    %c0_56 = arith.constant 0 : index
    %99 = vector.load %arg2[%c7_55, %c0_56] : memref<9x512xf32, #tpu.memory_space<vmem>>, vector<1x512xf32>
    %100 = vector.broadcast %99 : vector<1x512xf32> to vector<8x512xf32>
    %101 = arith.mulf %63, %100 : vector<8x512xf32>
    %102 = arith.addf %98, %101 : vector<8x512xf32>
    %c8_57 = arith.constant 8 : index
    %c0_58 = arith.constant 0 : index
    %103 = vector.load %arg2[%c8_57, %c0_58] : memref<9x512xf32, #tpu.memory_space<vmem>>, vector<1x512xf32>
    %c480_i32_59 = arith.constant 480 : i32
    %104 = tpu.dynamic_rotate %63 by %c480_i32_59 dim 1 : vector<8x512xf32>, i32 -> vector<8x512xf32>
    %105 = vector.broadcast %103 : vector<1x512xf32> to vector<8x512xf32>
    %106 = arith.mulf %104, %105 : vector<8x512xf32>
    %107 = arith.addf %102, %106 : vector<8x512xf32>
    %c0_60 = arith.constant 0 : index
    %c8_61 = arith.constant 8 : index
    %c0_62 = arith.constant 0 : index
    %108 = vector.load %arg4[%c0_60, %c8_61, %c0_62] : memref<1x16x512xf32, #tpu.memory_space<vmem>>, vector<1x8x512xf32>
    %109 = vector.shape_cast %108 : vector<1x8x512xf32> to vector<8x512xf32>
    %110 = vector.shape_cast %107 : vector<8x512xf32> to vector<1x8x512xf32>
    tpu.vector_store %arg4[%c0_60, %c8_61, %c0_62], %110 {strides = array<i32>} : memref<1x16x512xf32, #tpu.memory_space<vmem>>, vector<1x8x512xf32>,
    return
  }
  func.func @transform_0(%arg0: i32) -> (i32, i32, i32) {
    %c0_i32 = arith.constant 0 : i32
    %c0_i32_0 = arith.constant 0 : i32
    %c0_i32_1 = arith.constant 0 : i32
    return %arg0, %c0_i32, %c0_i32_0 : i32, i32, i32
  }
  func.func @transform_1(%arg0: i32) -> (i32, i32) {
    %c0_i32 = arith.constant 0 : i32
    %c0_i32_0 = arith.constant 0 : i32
    %c0_i32_1 = arith.constant 0 : i32
    return %c0_i32, %c0_i32_0 : i32, i32
  }
  func.func @transform_2(%arg0: i32) -> (i32, i32) {
    %c0_i32 = arith.constant 0 : i32
    %c0_i32_0 = arith.constant 0 : i32
    %c0_i32_1 = arith.constant 0 : i32
    return %c0_i32, %c0_i32_0 : i32, i32
  }
  func.func @transform_3(%arg0: i32) -> (i32, i32, i32) {
    %c0_i32 = arith.constant 0 : i32
    %c0_i32_0 = arith.constant 0 : i32
    %c0_i32_1 = arith.constant 0 : i32
    return %arg0, %c0_i32, %c0_i32_0 : i32, i32, i32
  }
}

</mosaic_0001>

<bundles_post_ra>
// kernel: tpu_custom_call.1
= control target key start
LH: loop header
LB: loop body
LE: loop exit
PB: predicated region body
PF: predicated region fallthrough
CT: control target
= control target key end

     0   :  { %8 = vsyncpa [#allocation3], 0  ;;  %s2191_s0 = inlined_call_operand.hbm [shape: f32[2,16,512], index: 0, kind: input, shape index: {}]   ;;  %s2192_s1 = inlined_call_operand.hbm [shape: f32[9,512], index: 1, kind: input, shape index: {}]   ;;  %s2193_s2 = inlined_call_operand.vmem [shape: f32[1,512], index: 2, kind: input, shape index: {}]   ;;  %s2194_s3 = inlined_call_operand.hbm [shape: f32[2,16,512], index: 3, kind: output, shape index: {}]  }
   0x1   :  { %10 = vsyncpa [#allocation3 + $0x1], 0 }
   0x2   :  { %11 = vsyncpa [#allocation6], 0 }
   0x3   :  { %12 = vsyncpa [#allocation4], 0 }
   0x4   :  { %14 = vsyncpa [#allocation4 + $0x1], 0  ;;  %s1435_s12 = smov 0   ;;  %s1437_s13 = smov 0  }
   0x5   :  { %s1439_s14 = smov 0   ;;  %s1441_s15 = smov 0  }
   0x6 LB: > { %s1456_s16 = sadd.s32 4294967295, %s1405_s15   ;;  %s1197_s17 = sadd.s32 4294967294, %s1405_s15   ;;  %s1405_s15 = sphi %s1441_s15, %s2237_s15   ;;  %s1401_s14 = sphi %s1439_s14, %s2236_s14   ;;  %s1397_s13 = sphi %s1437_s13, %s2235_s13   ;;  %s1393_s12 = sphi %s1435_s12, %s2234_s12  }
   0x7   : > { %p40_p0 = scmp.ne.s32.totalorder %s1397_s13, %s1393_s12  ;;  %p2195_p1 = scmp.eq.s32.totalorder %s1456_s16, 0 }
   0x8   : > { %p112_p3 = scmp.eq.s32.totalorder %s1197_s17, 1  ;;  %p1198_p5 = scmp.ge.s32.totalorder %s1405_s15, 1 }
   0x9   : > { %p1465_p4 = por %p2195_p1, %p40_p0  ;;  %p119_p7 = scmp.lt.s32.totalorder %s1405_s15, 3 }
   0xa   : > { %p1470_p6 = por %p112_p3, %p40_p0  ;;  %s1407_s21 = smov [#allocation5]  }
   0xb   : > { %s2202_s18 = scalar_select %p1465_p4, 1, 0 }
   0xc   : > { %s2203_s19 = scalar_select %p1470_p6, 1, 0 }
   0xd   : > { %p1475_p8 = pnand %p1198_p5, %p119_p7  ;;  %s131_s22 = sshll.u32 %s1407_s21, 4  ;;  %s1479_s22 = int_to_ptr.vmem [resolvable:$true] %s131_s22 }
   0xe   : > { %s1491_s24 = sadd.s32 1, %s1405_s15   ;;  %s27_s25 = sadd.s32 1, %s1401_s14 }
   0xf   : > { %s2204_s20 = scalar_select %p1475_p8, 1, 0 }
  0x10   : > { %p1223_p9 = pneg %p1475_p8  ;;  %s24_s26 = ssub.s32 %s1405_s15, %s1491_s24 }
  0x11   : > { %s1277_s29 = scalar_lea.hbm %s2192_s1, 1024 }
  0x12   : > { %p1486_p11 = pnand %p1223_p9, %p2195_p1  ;;  %p1278_p12 = scmp.ne.s32.totalorder %s2192_s1, %s1277_s29 }
  0x13   : > { %p1284_p5 = scmp.lt.u32.totalorder %s1277_s29, %s2192_s1 }
  0x14   : > { %p1279_p13 = pneg %p1486_p11 }
  0x16   : > { %p1280_p0 = pnand %p1279_p13, %p1278_p12 }
  0x18   : > { %p1281_p3 = pneg %p1280_p0 }
  0x1a   : > { %p1286_p7 = pnand %p1284_p5, %p1281_p3 }
  0x1c   : > { %1289 = shalt.err (!%p1286_p7)
}
  0x1d   : > { %s1290_s7 = scalar_lea.vmem %s1479_s22, 1024  ;;  %p1298_p2 = scmp.lt.s32.totalorder %s1479_s22, %s1479_s22 }
  0x1e   : > { %p1291_p9 = scmp.ne.s32.totalorder %s1479_s22, %s1290_s7  ;;  %p1299_p6 = scmp.lt.s32.totalorder %s1290_s7, %s1290_s7 }
  0x20   : > { %p1293_p10 = pnand %p1291_p9, %p1279_p13  ;;  %p1300_p4 = por %p1299_p6, %p1298_p2 }
  0x22   : > { %p1294_p1 = pneg %p1293_p10 }
  0x24   : > { %p1301_p8 = pnand %p1300_p4, %p1294_p1 }
  0x26   : > { %1304 = shalt.err (!%p1301_p8)
}
  0x27   : > { %s1408_s8 = smov 512   ;;  %s1409_s9 = smov 32  }
  0x28   : > { %1226 = dma.hbm_to_vmem [thread:$0]  (!%p1486_p11), %s2192_s1, 1024, %s1479_s22, [#allocation6], %s1408_s8, %s1408_s8, %s1409_s9  }
  0x29   : > { %p25_p1 = scmp.eq.s32.totalorder %s24_s26, 0  ;;  %p34_p2 = scmp.ne.s32.totalorder %s1401_s14, %s1397_s13 }
  0x2a   : > { %p35_p4 = scmp.eq.s32.totalorder %s1405_s15, 0  ;;  %p1236_p6 = scmp.lt.s32.totalorder %s1405_s15, 2 }
  0x2b   : > { %s1525_s17 = scalar_select %p25_p1, %s1401_s14, %s27_s25  }
  0x2c   : > { %p36_p8 = por %p35_p4, %p34_p2  ;;  %p2206_p10 = scmp.eq.s32.totalorder %s1456_s16, 1 }
  0x2d   : > { %s148_s23 = sand.u32 1, %s1401_s14   ;;  %s1213_s27 = sshll.u32 %s1405_s15, 10 }
  0x2e   : > { %p1529_p12 = por %p2206_p10, %p34_p2  ;;  %s1201_s28 = sshll.u32 %s148_s23, 6 }
  0x2f   : > { %s1538_s4 = scalar_lea.hbm %s2191_s0, %s1213_s27  ;;  %s152_s22 = scalar_lea.vmem [#allocation2], %s1201_s28 }
  0x30   : > { %s159_s25 = sshll.u32 %s152_s22, 4  ;;  %p1540_p11 = pnand %p1236_p6, %p36_p8  ;;  %s1544_s25 = int_to_ptr.vmem [resolvable:$true] %s159_s25 }
  0x31   : > { %s1546_s5 = scalar_lea.sflag [#allocation3], %s148_s23  ;;  %s1305_s6 = scalar_lea.hbm %s1538_s4, 1024 }
  0x32   : > { %p1306_p13 = scmp.ne.s32.totalorder %s1538_s4, %s1305_s6  ;;  %p1307_p0 = pneg %p1540_p11 }
  0x33   : > { %s1310_s11 = scalar_lea.hbm %s2191_s0, 2048  ;;  %p1311_p7 = scmp.lt.u32.totalorder %s1538_s4, %s2191_s0 }
  0x34   : > { %p1308_p3 = pnand %p1307_p0, %p1306_p13  ;;  %p1312_p9 = scmp.lt.u32.totalorder %s1310_s11, %s1305_s6 }
  0x35   : > { %p1314_p2 = scmp.lt.u32.totalorder %s1305_s6, %s1538_s4 }
  0x36   : > { %p1309_p5 = pneg %p1308_p3  ;;  %p1313_p1 = por %p1312_p9, %p1311_p7 }
  0x38   : > { %p1315_p4 = por %p1314_p2, %p1313_p1 }
  0x3a   : > { %p1316_p6 = pnand %p1315_p4, %p1309_p5 }
  0x3c   : > { %1319 = shalt.err (!%p1316_p6)
}
  0x3d   : > { %s1320_s23 = scalar_lea.vmem %s1544_s25, 1024  ;;  %s1410_s29 = smov [#allocation2]  }
  0x3e   : > { %p1321_p8 = scmp.ne.s32.totalorder %s1544_s25, %s1320_s23  ;;  %s1325_s30 = sshll.u32 %s1410_s29, 4  ;;  %s1326_s30 = int_to_ptr.vmem [resolvable:$false] %s1325_s30 }
  0x3f   : > { %s1327_s22 = scalar_lea.vmem %s1326_s30, 2048  ;;  %p1328_p3 = scmp.lt.s32.totalorder %s1544_s25, %s1326_s30 }
  0x40   : > { %p1323_p10 = pnand %p1321_p8, %p1307_p0  ;;  %p1329_p7 = scmp.lt.s32.totalorder %s1327_s22, %s1320_s23 }
  0x42   : > { %p1324_p13 = pneg %p1323_p10  ;;  %p1330_p9 = por %p1329_p7, %p1328_p3 }
  0x44   : > { %p1331_p1 = pnand %p1330_p9, %p1324_p13 }
  0x46   : > { %1334 = shalt.err (!%p1331_p1)
}
  0x47   : > { %1230 = dma.hbm_to_vmem [thread:$0]  (!%p1540_p11), %s1538_s4, 1024, %s1544_s25, %s1546_s5, %s1408_s8, %s1408_s8, %s1409_s9  }
  0x48   : > { %p2209_p0 = scmp.ne.s32.totalorder %s2204_s20, 0 }
  0x4a   : > { %171 = sbr.rel (%p2209_p0) target bundleno = 320 (0x140), region = 32 }
  0x51   : > { %s1580_s6 = sand.u32 1, %s1397_s13   ;;  %p2210_p5 = scmp.ne.s32.totalorder %s2202_s18, 0 }
  0x52   : > { %s1205_s7 = sshll.u32 %s1580_s6, 6  ;;  %s174_s10 = scalar_lea.sflag [#allocation3], %s1580_s6 }
  0x53   : > { %s1586_s26 = scalar_lea.vmem [#allocation2], %s1205_s7 }
  0x54   : > { %1380 = dma.done.wait (%p2210_p5), %s174_s10, 1024  }
  0x55   : > { %1382 = vsyncadd (%p2210_p5), %s174_s10, 4294966272  ;;  %p2211_p11 = scmp.eq.s32.totalorder %s1456_s16, 0 }
  0x57   : > { %1384 = dma.done.wait (%p2211_p11), [#allocation6], 1024   ;;  %p2212_p2 = pmov %p2211_p11 }
  0x58   : > { %v207_v0 = vld [vmem:[%s1586_s26 + $0x10] sm:$0x7f]  ;;  %vm221_vm0 = vcmask 1040384   ;;  %v205_v2 = vld [vmem:[%s1586_s26] sm:$0x7f]  ;;  %s1411_s18 = smov 32   ;;  %v239_v14 = vlaneseq }
  0x59   : > { %1386 = vsyncadd (%p2212_p2), [#allocation6], 4294966272  ;;  %v215_v1 = vrot.slane %v207_v0, 7  ;;  %v208_v3 = vld [vmem:[%s1586_s26 + $0x18] sm:$0x7f]  ;;  %v213_v4 = vrot.slane %v205_v2, 7 }
  0x5a   : > { %v216_v5 = vrot.slane %v208_v3, 7  ;;  %v206_v6 = vld [vmem:[%s1586_s26 + $0x8] sm:$0x7f]  ;;  %v671_v12 = vld [vmem:[%s1586_s26 + $0x8] sm:$0x80]  ;;  %s1412_s20 = smov 96  }
  0x5b   : > { %v1601_v7 = vsel %vm221_vm0, 0.0, %v215_v1  ;;  %v214_v8 = vrot.slane %v206_v6, 7  ;;  %v1606_v9 = vsel %vm221_vm0, 0.0, %v213_v4  ;;  %v675_v13 = vld [vmem:[%s1586_s26 + $0x28] sm:$0x7f]  ;;  %v714_v17 = vrot.slane %v671_v12, 7 }
  0x5c   : > { %264 = vrot.lane.b32.xlu1 %v1601_v7, %s1411_s18  ;;  %260 = vrot.lane.b32.xlu0 %v1606_v9, %s1411_s18  ;;  %v1611_v10 = vsel %vm221_vm0, 0.0, %v216_v5  ;;  %v670_v15 = vld [vmem:[%s1586_s26] sm:$0x80]  ;;  %v674_v16 = vld [vmem:[%s1586_s26 + $0x20] sm:$0x7f]  ;;  %v715_v18 = vrot.slane %v675_v13, 7 }
  0x5d   : > { %v1614_v11 = vsel %vm221_vm0, 0.0, %v214_v8  ;;  %v711_v19 = vrot.slane %v670_v15, 7  ;;  %v712_v20 = vrot.slane %v674_v16, 7  ;;  %v673_v21 = vld [vmem:[%s1586_s26 + $0x18] sm:$0x80]  ;;  %v240_v23 = vshrl.u32 %v239_v14, 7 }
  0x5e   : > { %v677_v22 = vld [vmem:[%s1586_s26 + $0x38] sm:$0x7f]  ;;  %v672_v24 = vld [vmem:[%s1586_s26 + $0x10] sm:$0x80]  ;;  %v676_v25 = vld [vmem:[%s1586_s26 + $0x30] sm:$0x7f]  ;;  %v716_v26 = vsel %vm221_vm0, %v714_v17, %v715_v18 }
  0x5f   : > { %v720_v27 = vrot.slane %v673_v21, 7  ;;  %v721_v28 = vrot.slane %v677_v22, 7  ;;  %v768_v29 = vld [vmem:[#allocation5 + $0x1] ss:$8 sm:$0xf]  ;;  %v713_v30 = vsel %vm221_vm0, %v711_v19, %v712_v20  ;;  %v717_v31 = vrot.slane %v672_v24, 7 }
  0x60   : > { %266 = vrot.lane.b32.xlu1 %v1611_v10, %s1411_s18  ;;  %262 = vrot.lane.b32.xlu0 %v1614_v11, %s1411_s18  ;;  %v718_v32 = vrot.slane %v676_v25, 7  ;;  %v1639_v33 = vsub.s32 0, %v240_v23  ;;  %v1641_v34 = vsub.s32 1, %v240_v23  ;;  %v1643_v35 = vsub.s32 2, %v240_v23  ;;  %v1662_v59 = vld [vmem:[%s1586_s26 + $0x8] sm:$0xff]  ;;  %v1668_v61 = vld [vmem:[%s1586_s26] sm:$0xff] }
  0x61   : > { %v1645_v36 = vsub.s32 3, %v240_v23  ;;  %v722_v39 = vsel %vm221_vm0, %v720_v27, %v721_v28  ;;  %v1684_v1 = vld [vmem:[%s1586_s26 + $0x18] sm:$0xff]  ;;  %v1687_v2 = vld [vmem:[%s1586_s26 + $0x10] sm:$0xff]  ;;  %v1694_v3 = vld [vmem:[%s1586_s26 + $0x28] sm:$0xff]  ;;  %vm506_vm1 = vcmask 1046528   ;;  %s2106_s4 = scalar_lea.vmem [#allocation7], %s1205_s7 }
  0x62   : > { %v777_v37 = vrot.slane %v768_v29, %v1641_v34  ;;  %v773_v38 = vrot.slane %v768_v29, %v1639_v33  ;;  %v719_v41 = vsel %vm221_vm0, %v717_v31, %v718_v32  ;;  %v781_v42 = vrot.slane %v768_v29, %v1643_v35  ;;  %v1697_v4 = vld [vmem:[%s1586_s26 + $0x20] sm:$0xff]  ;;  %v1704_v6 = vld [vmem:[%s1586_s26 + $0x38] sm:$0xff]  ;;  %v1707_v8 = vld [vmem:[%s1586_s26 + $0x30] sm:$0xff]  ;;  %s1214_s25 = sshll.u32 %s1456_s16, 10  ;;  %s1114_s5 = sshll.u32 %s2106_s4, 4  ;;  %s2143_s5 = int_to_ptr.vmem [resolvable:$true] %s1114_s5 }
  0x63   : > { %v785_v40 = vrot.slane %v768_v29, %v1645_v36  ;;  %v565_v5 = vld [vmem:[#allocation5 + $0x7] ss:$8 sm:$0xf]  ;;  %s2141_s27 = scalar_lea.hbm %s2194_s3, %s1214_s25  ;;  %s1101_s28 = scalar_lea.sflag [#allocation4], %s1580_s6 }
  0x64   : > { %339 = vrot.lane.b32.xlu1 %v1614_v11, %s1412_s20  ;;  %337 = vrot.lane.b32.xlu0 %v1606_v9, %s1412_s20  ;;  %v791_v43 = vmul.f32 %v777_v37, %v671_v12  ;;  %v795_v44 = vmul.f32 %v777_v37, %v675_v13  ;;  %v790_v45 = vmul.f32 %v773_v38, %v670_v15  ;;  %v231_v13 = vld [vmem:[%s1586_s26 + $0x8] sm:$0xfe]  ;;  %v235_v15 = vld [vmem:[%s1586_s26 + $0x28] sm:$0x1]  ;;  %s1335_s23 = scalar_lea.vmem %s2143_s5, 1024  ;;  %s1413_s29 = smov [#allocation7]  }
  0x65   : > { %v794_v46 = vmul.f32 %v773_v38, %v674_v16  ;;  %v793_v47 = vmul.f32 %v785_v40, %v673_v21  ;;  %v797_v48 = vmul.f32 %v785_v40, %v677_v22  ;;  %v792_v49 = vmul.f32 %v781_v42, %v672_v24  ;;  %v230_v21 = vld [vmem:[%s1586_s26] sm:$0xfe]  ;;  %v234_v22 = vld [vmem:[%s1586_s26 + $0x20] sm:$0x1]  ;;  %v233_v23 = vld [vmem:[%s1586_s26 + $0x18] sm:$0xfe]  ;;  %p1336_p4 = scmp.ne.s32.totalorder %s2143_s5, %s1335_s23 }
  0x66   : > { %v796_v50 = vmul.f32 %v781_v42, %v676_v25  ;;  %v809_v51 = vrot.slane %v791_v43, 7  ;;  %v810_v52 = vrot.slane %v795_v44, 7  ;;  %v806_v53 = vrot.slane %v790_v45, 7  ;;  %v237_v24 = vld [vmem:[%s1586_s26 + $0x38] sm:$0x1]  ;;  %s1339_s30 = sshll.u32 %s1413_s29, 4  ;;  %s1340_s30 = int_to_ptr.vmem [resolvable:$false] %s1339_s30 }
  0x67   : > { %v807_v54 = vrot.slane %v794_v46, 7  ;;  %v815_v55 = vrot.slane %v793_v47, 7  ;;  %v816_v56 = vrot.slane %v797_v48, 7  ;;  %v812_v57 = vrot.slane %v792_v49, 7  ;;  %v232_v29 = vld [vmem:[%s1586_s26 + $0x10] sm:$0xfe]  ;;  %p1337_p6 = pnand %p1336_p4, %p1529_p12  ;;  %p1342_p10 = scmp.lt.s32.totalorder %s2143_s5, %s1340_s30 }
  0x68   : > { %343 = vrot.lane.b32.xlu1 %v1611_v10, %s1412_s20  ;;  %341 = vrot.lane.b32.xlu0 %v1601_v7, %s1412_s20  ;;  %v813_v58 = vrot.slane %v796_v50, 7  ;;  %v1674_v63 = vsel %vm221_vm0, %v809_v51, %v810_v52  ;;  %v574_v12 = vrot.slane %v565_v5, %v1641_v34  ;;  %v570_v17 = vrot.slane %v565_v5, %v1639_v33  ;;  %s1341_s22 = scalar_lea.vmem %s1340_s30, 2048 }
  0x69   : > { %v1665_v60 = vsel %vm221_vm0, %v806_v53, %v807_v54  ;;  %v1671_v62 = vsel %vm221_vm0, %v815_v55, %v816_v56  ;;  %v582_v18 = vrot.slane %v565_v5, %v1645_v36  ;;  %v578_v20 = vrot.slane %v565_v5, %v1643_v35  ;;  %v683_v5 = vld [vmem:[%s1586_s26 + $0x28] sm:$0xfe]  ;;  %p1338_p8 = pneg %p1337_p6  ;;  %p1343_p13 = scmp.lt.s32.totalorder %s1341_s22, %s1335_s23 }
  0x6a   : > { %v1677_v0 = vsel %vm221_vm0, %v812_v57, %v813_v58  ;;  %v588_v16 = vmul.f32 %v574_v12, %v231_v13  ;;  %v592_v19 = vmul.f32 %v574_v12, %v235_v15  ;;  %v591_v27 = vmul.f32 %v570_v17, %v234_v22  ;;  %v682_v12 = vld [vmem:[%s1586_s26 + $0x20] sm:$0xfe] }
  0x6b   : > { %v590_v28 = vmul.f32 %v582_v18, %v233_v23  ;;  %v594_v32 = vmul.f32 %v582_v18, %v237_v24  ;;  %v589_v37 = vmul.f32 %v578_v20, %v232_v29  ;;  %v510_v46 = vrot.slane %v231_v13, 1  ;;  %v685_v18 = vld [vmem:[%s1586_s26 + $0x38] sm:$0xfe]  ;;  %p1344_p3 = por %p1343_p13, %p1342_p10 }
  0x6c   : > { %729 = vrot.lane.b32.xlu1 %v716_v26, %s1411_s18  ;;  %727 = vrot.lane.b32.xlu0 %v713_v30, %s1411_s18  ;;  %v606_v25 = vrot.slane %v588_v16, 1  ;;  %v607_v31 = vrot.slane %v592_v19, 1  ;;  %v604_v40 = vrot.slane %v591_v27, 1  ;;  %v511_v47 = vrot.slane %v235_v15, 1  ;;  %v684_v19 = vld [vmem:[%s1586_s26 + $0x30] sm:$0xfe] }
  0x6d   : > { %v613_v42 = vrot.slane %v594_v32, 1  ;;  %v609_v43 = vrot.slane %v589_v37, 1  ;;  %v507_v48 = vrot.slane %v230_v21, 1  ;;  %v508_v49 = vrot.slane %v234_v22, 1  ;;  %v204_v37 = vld [vmem:[%s2193_s2] sm:$0xf]  ;;  %p1345_p7 = pnand %p1344_p3, %p1338_p8 }
  0x6e   : > { %v1736_v45 = vsel %vm506_vm1, %v606_v25, %v607_v31  ;;  %v512_v53 = vsel %vm506_vm1, %v510_v46, %v511_v47  ;;  %v516_v54 = vrot.slane %v233_v23, 1  ;;  %v517_v55 = vrot.slane %v237_v24, 1 }
  0x6f   : > { %2213 = vst [vmem:[#allocation11_spill] sm:$0xff] %v1736_v45  ;;  %v509_v56 = vsel %vm506_vm1, %v507_v48, %v508_v49  ;;  %v513_v57 = vrot.slane %v232_v29, 1  ;;  %v691_v15 = vrot.slane %v683_v5, 1  ;;  %v692_v23 = vrot.slane %v684_v19, 1 }
  0x70   : > { %733 = vrot.lane.b32.xlu1 %v722_v39, %s1411_s18  ;;  %731 = vrot.lane.b32.xlu0 %v719_v41, %s1411_s18  ;;  %v518_v13 = vsel %vm506_vm1, %v516_v54, %v517_v55  ;;  %v1798_v27 = vand.u32 127, %v239_v14  ;;  %v1815_v47 = vrot.slane %v204_v37, %v1639_v33  ;;  %v1818_v48 = vrot.slane %v204_v37, %v1645_v36 }
  0x71   : > { %v1779_v25 = vsel %vm506_vm1, %v692_v23, 0.0  ;;  %v1825_v55 = vrot.slane %v204_v37, %v1641_v34 }
  0x72   : > { %2220 = vst [vmem:[#allocation18_spill] sm:$0xff] %v1779_v25  ;;  %vm270_vm2 = vcmp.lt.s32.totalorder %v1798_v27, 32  ;;  %vm345_vm3 = vcmp.lt.s32.totalorder %v1798_v27, 96 }
  0x74   : > { %829 = vrot.lane.b32.xlu1 %v716_v26, %s1412_s20  ;;  %827 = vrot.lane.b32.xlu0 %v713_v30, %s1412_s20  ;;  %v587_v26 = vmul.f32 %v570_v17, %v230_v21  ;;  %v236_v30 = vld [vmem:[%s1586_s26 + $0x30] sm:$0x1]  ;;  %v690_v17 = vrot.slane %v682_v12, 1  ;;  %v693_v21 = vrot.slane %v685_v18, 1 }
  0x75   : > { %v593_v38 = vmul.f32 %v578_v20, %v236_v30  ;;  %v514_v58 = vrot.slane %v236_v30, 1  ;;  %v1766_v20 = vsel %vm506_vm1, %v691_v15, 0.0 }
  0x76   : > { %2217 = vst [vmem:[#allocation15_spill] sm:$0xff] %v1766_v20  ;;  %v1769_v22 = vsel %vm506_vm1, %v690_v17, 0.0  ;;  %v1776_v24 = vsel %vm506_vm1, %v693_v21, 0.0 }
  0x77   : > { %v610_v44 = vrot.slane %v593_v38, 1  ;;  %v515_v16 = vsel %vm506_vm1, %v513_v57, %v514_v58  ;;  %2218 = vst [vmem:[#allocation16_spill] sm:$0xff] %v1769_v22  ;;  %2219 = vst [vmem:[#allocation17_spill] sm:$0xff] %v1776_v24 }
  0x78   : > { %833 = vrot.lane.b32.xlu1 %v722_v39, %s1412_s20  ;;  %831 = vrot.lane.b32.xlu0 %v719_v41, %s1412_s20  ;;  %v603_v39 = vrot.slane %v587_v26, 1  ;;  %v612_v41 = vrot.slane %v590_v28, 1  ;;  %v305_v26 = vld [vmem:[#allocation5 + $0x1] ss:$8 sm:$0xf] }
  0x79   : > { %v1749_v52 = vsel %vm506_vm1, %v609_v43, %v610_v44  ;;  %v259_v28 = vld [vmem:[#allocation5] ss:$8 sm:$0xf]  ;;  %v310_v29 = vrot.slane %v305_v26, %v1639_v33  ;;  %v322_v30 = vrot.slane %v305_v26, %v1645_v36  ;;  %v318_v14 = vrot.slane %v305_v26, %v1643_v35 }
  0x7a   : > { %v1743_v50 = vsel %vm506_vm1, %v603_v39, %v604_v40  ;;  %v1746_v51 = vsel %vm506_vm1, %v612_v41, %v613_v42  ;;  %2216 = vst [vmem:[#allocation14_spill] sm:$0xff] %v1749_v52  ;;  %v279_v38 = vrot.slane %v259_v28, %v1639_v33  ;;  %v291_v39 = vrot.slane %v259_v28, %v1645_v36 }
  0x7b   : > { %2214 = vst [vmem:[#allocation12_spill] sm:$0xff] %v1743_v50  ;;  %2215 = vst [vmem:[#allocation13_spill] sm:$0xff] %v1746_v51  ;;  %v314_v40 = vrot.slane %v305_v26, %v1641_v34  ;;  %v283_v41 = vrot.slane %v259_v28, %v1641_v34  ;;  %v287_v42 = vrot.slane %v259_v28, %v1643_v35  ;;  %v336_v26 = vld [vmem:[#allocation5 + $0x2] ss:$8 sm:$0xf] }
  0x7c   : > { %383 = vrot.lane.b32.xlu1 %v1662_v59, %s1411_s18  ;;  %381 = vrot.lane.b32.xlu0 %v1668_v61, %s1411_s18  ;;  %v327_v43 = vmul.f32 %v310_v29, %v1606_v9  ;;  %v330_v44 = vmul.f32 %v322_v30, %v1611_v10  ;;  %v1828_v9 = vrot.slane %v204_v37, %v1643_v35 }
  0x7d   : > { %v329_v5 = vmul.f32 %v318_v14, %v1601_v7  ;;  %v328_v12 = vmul.f32 %v314_v40, %v1614_v11  ;;  %v358_v7 = vrot.slane %v336_v26, %v1641_v34  ;;  %v423_v14 = vld [vmem:[#allocation5 + $0x4] ss:$8 sm:$0xf] }
  0x80   : > { %387 = vrot.lane.b32.xlu1 %v1684_v1, %s1411_s18  ;;  %385 = vrot.lane.b32.xlu0 %v1687_v2, %s1411_s18 }
  0x84   : > { %871 = vrot.lane.b32.xlu1 %v1694_v3, %s1411_s18  ;;  %869 = vrot.lane.b32.xlu0 %v1697_v4, %s1411_s18 }
  0x88   : > { %875 = vrot.lane.b32.xlu1 %v1704_v6, %s1411_s18  ;;  %873 = vrot.lane.b32.xlu0 %v1707_v8, %s1411_s18 }
  0x8c   : > { %457 = vrot.lane.b32.xlu1 %v1662_v59, %s1412_s20  ;;  %455 = vrot.lane.b32.xlu0 %v1668_v61, %s1412_s20 }
  0x90   : > { %461 = vrot.lane.b32.xlu1 %v1684_v1, %s1412_s20  ;;  %459 = vrot.lane.b32.xlu0 %v1687_v2, %s1412_s20 }
  0x94   : > { %943 = vrot.lane.b32.xlu1 %v1694_v3, %s1412_s20  ;;  %941 = vrot.lane.b32.xlu0 %v1697_v4, %s1412_s20 }
  0x98   : > { %947 = vrot.lane.b32.xlu1 %v1704_v6, %s1412_s20  ;;  %945 = vrot.lane.b32.xlu0 %v1707_v8, %s1412_s20 }
  0x9c   : > { %525 = vrot.lane.b32.xlu1 %v512_v53, %s1411_s18  ;;  %523 = vrot.lane.b32.xlu0 %v509_v56, %s1411_s18 }
  0xa0   : > { %529 = vrot.lane.b32.xlu1 %v518_v13, %s1411_s18  ;;  %527 = vrot.lane.b32.xlu0 %v515_v16, %s1411_s18 }
  0xa4   : > { %985 = vrot.lane.b32.xlu1 %v1766_v20, %s1411_s18  ;;  %983 = vrot.lane.b32.xlu0 %v1769_v22, %s1411_s18 }
  0xa8   : > { %989 = vrot.lane.b32.xlu1 %v1776_v24, %s1411_s18  ;;  %987 = vrot.lane.b32.xlu0 %v1779_v25, %s1411_s18 }
  0xac   : > { %627 = vrot.lane.b32.xlu1 %v512_v53, %s1412_s20  ;;  %625 = vrot.lane.b32.xlu0 %v509_v56, %s1412_s20 }
  0xb0   : > { %631 = vrot.lane.b32.xlu1 %v518_v13, %s1412_s20  ;;  %629 = vrot.lane.b32.xlu0 %v515_v16, %s1412_s20 }
  0xb4   : > { %1057 = vrot.lane.b32.xlu1 %v1766_v20, %s1412_s20  ;;  %1055 = vrot.lane.b32.xlu0 %v1769_v22, %s1412_s20 }
  0xb8   : > { %1061 = vrot.lane.b32.xlu1 %v1776_v24, %s1412_s20  ;;  %1059 = vrot.lane.b32.xlu0 %v1779_v25, %s1412_s20 }
  0xce   : > { %v265_v31 = vpop.permute.xlu1 %264  ;;  %v261_v32 = vpop.permute.xlu0 %260 }
  0xd2   : > { %v267_v46 = vpop.permute.xlu1 %266  ;;  %v263_v54 = vpop.permute.xlu0 %262 }
  0xd3   : > { %v271_v49 = vsel %vm270_vm2, %v265_v31, %v267_v46  ;;  %v274_v53 = vsel %vm270_vm2, %v267_v46, %v261_v32  ;;  %v272_v57 = vsel %vm270_vm2, %v263_v54, %v265_v31  ;;  %v273_v58 = vsel %vm270_vm2, %v261_v32, %v263_v54 }
  0xd4   : > { %v296_v10 = vmul.f32 %v279_v38, %v274_v53  ;;  %v299_v56 = vmul.f32 %v291_v39, %v271_v49  ;;  %v297_v13 = vmul.f32 %v283_v41, %v273_v58  ;;  %v298_v15 = vmul.f32 %v287_v42, %v272_v57  ;;  %v1852_v42 = vld [vmem:[#allocation5 + $0x4] ss:$8 sm:$0xf]  ;;  %v702_v57 = vld [vmem:[#allocation5] ss:$8 sm:$0xf] }
  0xd5   : > { %v428_v46 = vrot.slane %v423_v14, %v1639_v33  ;;  %v440_v49 = vrot.slane %v423_v14, %v1645_v36  ;;  %v436_v54 = vrot.slane %v423_v14, %v1643_v35 }
  0xd6   : > { %v300_v16 = vadd.f32 %v296_v10, %v1815_v47  ;;  %v303_v17 = vadd.f32 %v299_v56, %v1818_v48  ;;  %v340_v18 = vpop.permute.xlu1 %339  ;;  %v301_v19 = vadd.f32 %v297_v13, %v1825_v55  ;;  %v302_v21 = vadd.f32 %v298_v15, %v1828_v9  ;;  %v338_v23 = vpop.permute.xlu0 %337  ;;  %v1908_v15 = vld [vmem:[#allocation5 + $0x3] ss:$8 sm:$0xf] }
  0xd7   : > { %v919_v10 = vrot.slane %v1852_v42, %v1641_v34 }
  0xd8   : > { %v1840_v28 = vadd.f32 %v327_v43, %v300_v16  ;;  %v1842_v29 = vadd.f32 %v330_v44, %v303_v17  ;;  %v332_v11 = vadd.f32 %v328_v12, %v301_v19  ;;  %v1845_v30 = vadd.f32 %v329_v5, %v302_v21 }
  0xd9   : > { %v432_v43 = vrot.slane %v423_v14, %v1641_v34  ;;  %v1864_v5 = vmul.f32 %v428_v46, %v1668_v61  ;;  %v1867_v12 = vmul.f32 %v440_v49, %v1684_v1  ;;  %v1874_v17 = vmul.f32 %v436_v54, %v1687_v2  ;;  %v1882_v1 = vld [vmem:[#allocation5 + $0x2] ss:$8 sm:$0xf]  ;;  %v380_v46 = vld [vmem:[#allocation5 + $0x3] ss:$8 sm:$0xf] }
  0xda   : > { %v344_v31 = vpop.permute.xlu1 %343  ;;  %v342_v32 = vpop.permute.xlu0 %341  ;;  %v354_v19 = vrot.slane %v336_v26, %v1639_v33  ;;  %v348_v21 = vsel %vm345_vm3, %v338_v23, %v340_v18  ;;  %v747_v2 = vrot.slane %v702_v57, %v1641_v34  ;;  %v743_v14 = vrot.slane %v702_v57, %v1639_v33 }
  0xdb   : > { %v347_v37 = vsel %vm345_vm3, %v340_v18, %v342_v32  ;;  %v1861_v56 = vmul.f32 %v432_v43, %v1662_v59  ;;  %v1877_v59 = vmul.f32 %v919_v10, %v1694_v3  ;;  %v349_v3 = vsel %vm345_vm3, %v344_v31, %v338_v23 }
  0xdc   : > { %v372_v38 = vmul.f32 %v358_v7, %v347_v37  ;;  %v366_v7 = vrot.slane %v336_v26, %v1645_v36  ;;  %v346_v37 = vsel %vm345_vm3, %v342_v32, %v344_v31  ;;  %v755_v49 = vrot.slane %v702_v57, %v1645_v36 }
  0xdd   : > { %v843_v23 = vrot.slane %v1882_v1, %v1639_v33  ;;  %v371_v10 = vmul.f32 %v354_v19, %v348_v21  ;;  %v855_v31 = vrot.slane %v1882_v1, %v1645_v36  ;;  %v847_v32 = vrot.slane %v1882_v1, %v1641_v34 }
  0xde   : > { %v730_v39 = vpop.permute.xlu1 %729  ;;  %v1850_v40 = vadd.f32 %v372_v38, %v332_v11  ;;  %v728_v41 = vpop.permute.xlu0 %727  ;;  %v362_v11 = vrot.slane %v336_v26, %v1643_v35  ;;  %v751_v26 = vrot.slane %v702_v57, %v1643_v35  ;;  %v851_v61 = vrot.slane %v1882_v1, %v1643_v35 }
  0xdf   : > { %v737_v38 = vsel %vm270_vm2, %v728_v41, %v730_v39  ;;  %v401_v57 = vrot.slane %v380_v46, %v1641_v34  ;;  %v397_v19 = vrot.slane %v380_v46, %v1639_v33  ;;  %v405_v21 = vrot.slane %v380_v46, %v1643_v35 }
  0xe0   : > { %v373_v13 = vmul.f32 %v362_v11, %v346_v37  ;;  %v761_v25 = vmul.f32 %v747_v2, %v737_v38  ;;  %v409_v20 = vrot.slane %v380_v46, %v1645_v36  ;;  %v885_v11 = vrot.slane %v1908_v15, %v1639_v33 }
  0xe1   : > { %v375_v2 = vadd.f32 %v371_v10, %v1840_v28  ;;  %v893_v37 = vrot.slane %v1908_v15, %v1643_v35 }
  0xe2   : > { %v734_v44 = vpop.permute.xlu1 %733  ;;  %v732_v53 = vpop.permute.xlu0 %731  ;;  %v765_v38 = vadd.f32 %v761_v25, %v1825_v55 }
  0xe3   : > { %v738_v18 = vsel %vm270_vm2, %v734_v44, %v728_v41  ;;  %v374_v41 = vmul.f32 %v366_v7, %v349_v3  ;;  %v735_v52 = vsel %vm270_vm2, %v732_v53, %v734_v44  ;;  %v736_v1 = vsel %vm270_vm2, %v730_v39, %v732_v53 }
  0xe4   : > { %v760_v24 = vmul.f32 %v743_v14, %v738_v18  ;;  %v889_v7 = vrot.slane %v1908_v15, %v1641_v34  ;;  %v897_v44 = vrot.slane %v1908_v15, %v1645_v36  ;;  %v377_v53 = vadd.f32 %v373_v13, %v1845_v30 }
  0xe5   : > { %v378_v39 = vadd.f32 %v374_v41, %v1842_v29  ;;  %v762_v18 = vmul.f32 %v751_v26, %v736_v1  ;;  %v763_v28 = vmul.f32 %v755_v49, %v735_v52  ;;  %v823_v49 = vadd.f32 %v1674_v63, %v765_v38 }
  0xe6   : > { %v830_v58 = vpop.permute.xlu1 %829  ;;  %v828_v16 = vpop.permute.xlu0 %827  ;;  %v764_v46 = vadd.f32 %v760_v24, %v1815_v47 }
  0xe7   : > { %v837_v45 = vsel %vm345_vm3, %v828_v16, %v830_v58 }
  0xe8   : > { %v822_v41 = vadd.f32 %v1665_v60, %v764_v46  ;;  %v2221_v60 = vrot.slane %v1852_v42, %v1639_v33 }
  0xea   : > { %v834_v43 = vpop.permute.xlu1 %833  ;;  %v832_v54 = vpop.permute.xlu0 %831 }
  0xeb   : > { %v836_v10 = vsel %vm345_vm3, %v830_v58, %v832_v54  ;;  %v838_v15 = vsel %vm345_vm3, %v834_v43, %v828_v16  ;;  %v835_v24 = vsel %vm345_vm3, %v832_v54, %v834_v43 }
  0xec   : > { %v861_v58 = vmul.f32 %v847_v32, %v836_v10  ;;  %v863_v32 = vmul.f32 %v855_v31, %v838_v15 }
  0xee   : > { %v384_v22 = vpop.permute.xlu1 %383  ;;  %v382_v51 = vpop.permute.xlu0 %381 }
  0xef   : > { %v391_v3 = vsel %vm270_vm2, %v382_v51, %v384_v22 }
  0xf0   : > { %v415_v14 = vmul.f32 %v401_v57, %v391_v3 }
  0xf2   : > { %v388_v50 = vpop.permute.xlu1 %387  ;;  %v419_v29 = vadd.f32 %v415_v14, %v1850_v40  ;;  %v386_v55 = vpop.permute.xlu0 %385  ;;  %v766_v40 = vadd.f32 %v762_v18, %v1828_v9  ;;  %v865_v9 = vadd.f32 %v861_v58, %v823_v49  ;;  %v497_v58 = vld [vmem:[#allocation5 + $0x6] ss:$8 sm:$0xf] }
  0xf3   : > { %v392_v25 = vsel %vm270_vm2, %v388_v50, %v382_v51  ;;  %v389_v47 = vsel %vm270_vm2, %v386_v55, %v388_v50  ;;  %v390_v30 = vsel %vm270_vm2, %v384_v22, %v386_v55  ;;  %v767_v51 = vadd.f32 %v763_v28, %v1818_v48 }
  0xf4   : > { %v414_v52 = vmul.f32 %v397_v19, %v392_v25  ;;  %v416_v13 = vmul.f32 %v405_v21, %v390_v30  ;;  %v417_v26 = vmul.f32 %v409_v20, %v389_v47  ;;  %v1949_v16 = vadd.f32 %v1861_v56, %v419_v29 }
  0xf5   : > { %v860_v50 = vmul.f32 %v843_v23, %v837_v45  ;;  %v862_v21 = vmul.f32 %v851_v61, %v835_v24  ;;  %v932_v45 = vmul.f32 %v2221_v60, %v1697_v4  ;;  %v2222_v61 = vrot.slane %v1852_v42, %v1645_v36 }
  0xf6   : > { %v418_v43 = vadd.f32 %v414_v52, %v375_v2  ;;  %v872_v54 = vpop.permute.xlu1 %871  ;;  %v420_v57 = vadd.f32 %v416_v13, %v377_v53  ;;  %v421_v19 = vadd.f32 %v417_v26, %v378_v39  ;;  %v870_v22 = vpop.permute.xlu0 %869  ;;  %v824_v2 = vadd.f32 %v1677_v0, %v766_v40 }
  0xf7   : > { %v879_v20 = vsel %vm270_vm2, %v870_v22, %v872_v54  ;;  %v935_v23 = vmul.f32 %v2222_v61, %v1704_v6  ;;  %v551_v61 = vrot.slane %v497_v58, %v1645_v36 }
  0xf8   : > { %v449_v56 = vadd.f32 %v1864_v5, %v418_v43  ;;  %v903_v1 = vmul.f32 %v889_v7, %v879_v20  ;;  %v1959_v48 = vadd.f32 %v1867_v12, %v421_v19  ;;  %v1962_v63 = vadd.f32 %v1874_v17, %v420_v57 }
  0xf9   : > { %v2223_v5 = vrot.slane %v1852_v42, %v1643_v35  ;;  %v825_v12 = vadd.f32 %v1671_v62, %v767_v51  ;;  %v864_v17 = vadd.f32 %v860_v50, %v822_v41  ;;  %v543_v41 = vrot.slane %v497_v58, %v1641_v34 }
  0xfa   : > { %v876_v7 = vpop.permute.xlu1 %875  ;;  %v907_v3 = vadd.f32 %v903_v1, %v865_v9  ;;  %v874_v39 = vpop.permute.xlu0 %873  ;;  %v539_v20 = vrot.slane %v497_v58, %v1639_v33  ;;  %v547_v9 = vrot.slane %v497_v58, %v1643_v35  ;;  %v982_v58 = vld [vmem:[#allocation5 + $0x6] ss:$8 sm:$0xf] }
  0xfb   : > { %v934_v31 = vmul.f32 %v2223_v5, %v1707_v8  ;;  %v880_v4 = vsel %vm270_vm2, %v876_v7, %v870_v22  ;;  %v867_v53 = vadd.f32 %v863_v32, %v825_v12  ;;  %v877_v6 = vsel %vm270_vm2, %v874_v39, %v876_v7 }
  0xfc   : > { %v902_v38 = vmul.f32 %v885_v11, %v880_v4  ;;  %v878_v42 = vsel %vm270_vm2, %v872_v54, %v874_v39  ;;  %v866_v8 = vadd.f32 %v862_v21, %v824_v2  ;;  %v905_v62 = vmul.f32 %v897_v44, %v877_v6  ;;  %v454_v44 = vld [vmem:[#allocation5 + $0x5] ss:$8 sm:$0xf] }
  0xfd   : > { %v904_v14 = vmul.f32 %v893_v37, %v878_v42  ;;  %v1985_v46 = vadd.f32 %v1877_v59, %v907_v3  ;;  %v475_v59 = vrot.slane %v454_v44, %v1641_v34  ;;  %v471_v13 = vrot.slane %v454_v44, %v1639_v33 }
  0xfe   : > { %v906_v0 = vadd.f32 %v902_v38, %v864_v17  ;;  %v458_v18 = vpop.permute.xlu1 %457  ;;  %v909_v10 = vadd.f32 %v905_v62, %v867_v53  ;;  %v456_v15 = vpop.permute.xlu0 %455  ;;  %v483_v51 = vrot.slane %v454_v44, %v1645_v36  ;;  %v479_v43 = vrot.slane %v454_v44, %v1643_v35  ;;  %v2022_v17 = vld [vmem:[#allocation5 + $0x7] ss:$8 sm:$0xf]  ;;  %v940_v62 = vld [vmem:[#allocation5 + $0x5] ss:$8 sm:$0xf] }
  0xff   : > { %v908_v28 = vadd.f32 %v904_v14, %v866_v8  ;;  %v465_v40 = vsel %vm345_vm3, %v456_v15, %v458_v18  ;;  %v2224_v38 = vld [vmem:[#allocation11_spill] sm:$0xff]  ;;  %v1033_v14 = vrot.slane %v2022_v17, %v1641_v34  ;;  %v2227_v44 = vld [vmem:[#allocation14_spill] sm:$0xff] }
 0x100   : > { %v1987_v29 = vadd.f32 %v932_v45, %v906_v0  ;;  %v1989_v11 = vadd.f32 %v935_v23, %v909_v10  ;;  %v488_v19 = vmul.f32 %v471_v13, %v465_v40  ;;  %v2225_v10 = vld [vmem:[#allocation12_spill] sm:$0xff] }
 0x101   : > { %v1991_v25 = vadd.f32 %v934_v31, %v908_v28  ;;  %v624_v40 = vld [vmem:[#allocation5 + $0x20] ss:$8 sm:$0xf] }
 0x102   : > { %v462_v55 = vpop.permute.xlu1 %461  ;;  %v460_v24 = vpop.permute.xlu0 %459  ;;  %v492_v5 = vadd.f32 %v488_v19, %v449_v56 }
 0x103   : > { %v464_v47 = vsel %vm345_vm3, %v458_v18, %v460_v24  ;;  %v466_v49 = vsel %vm345_vm3, %v462_v55, %v456_v15  ;;  %v463_v50 = vsel %vm345_vm3, %v460_v24, %v462_v55  ;;  %v2226_v55 = vld [vmem:[#allocation13_spill] sm:$0xff] }
 0x104   : > { %v489_v54 = vmul.f32 %v475_v59, %v464_v47  ;;  %v491_v32 = vmul.f32 %v483_v51, %v466_v49  ;;  %v490_v1 = vmul.f32 %v479_v43, %v463_v50  ;;  %v957_v47 = vrot.slane %v940_v62, %v1639_v33  ;;  %v2228_v51 = vld [vmem:[#allocation15_spill] sm:$0xff]  ;;  %v2229_v43 = vld [vmem:[#allocation16_spill] sm:$0xff] }
 0x105   : > { %v2046_v49 = vmul.f32 %v1033_v14, %v2228_v51 }
 0x106   : > { %v1993_v52 = vpop.permute.xlu1 %943  ;;  %v1995_v37 = vpop.permute.xlu0 %941  ;;  %v493_v60 = vadd.f32 %v489_v54, %v1949_v16  ;;  %v495_v2 = vadd.f32 %v491_v32, %v1959_v48  ;;  %v494_v39 = vadd.f32 %v490_v1, %v1962_v63  ;;  %v1029_v48 = vrot.slane %v2022_v17, %v1639_v33 }
 0x107   : > { %v1041_v63 = vrot.slane %v2022_v17, %v1645_v36  ;;  %v969_v32 = vrot.slane %v940_v62, %v1645_v36  ;;  %v999_v1 = vrot.slane %v982_v58, %v1639_v33 }
 0x108   : > { %v2049_v54 = vmul.f32 %v1029_v48, %v2229_v43 }
 0x10a   : > { %v2000_v30 = vpop.permute.xlu1 %947  ;;  %v2003_v26 = vpop.permute.xlu0 %945 }
 0x10e   : > { %v526_v57 = vpop.permute.xlu1 %525  ;;  %v524_v22 = vpop.permute.xlu0 %523 }
 0x10f   : > { %v533_v21 = vsel %vm270_vm2, %v524_v22, %v526_v57 }
 0x110   : > { %v557_v45 = vmul.f32 %v543_v41, %v533_v21  ;;  %v951_v41 = vsel %vm345_vm3, %v1995_v37, %v1993_v52  ;;  %v961_v21 = vrot.slane %v940_v62, %v1641_v34 }
 0x112   : > { %v530_v23 = vpop.permute.xlu1 %529  ;;  %v561_v31 = vadd.f32 %v557_v45, %v493_v60  ;;  %v528_v7 = vpop.permute.xlu0 %527  ;;  %v641_v60 = vrot.slane %v624_v40, %v1639_v33  ;;  %v974_v45 = vmul.f32 %v957_v47, %v951_v41 }
 0x113   : > { %v534_v12 = vsel %vm270_vm2, %v530_v23, %v524_v22  ;;  %v531_v4 = vsel %vm270_vm2, %v528_v7, %v530_v23  ;;  %v532_v16 = vsel %vm270_vm2, %v526_v57, %v528_v7  ;;  %v2230_v57 = vld [vmem:[#allocation17_spill] sm:$0xff]  ;;  %v1037_v22 = vrot.slane %v2022_v17, %v1643_v35 }
 0x114   : > { %v556_v3 = vmul.f32 %v539_v20, %v534_v12  ;;  %v558_v53 = vmul.f32 %v547_v9, %v532_v16  ;;  %v559_v56 = vmul.f32 %v551_v61, %v531_v4  ;;  %v2031_v6 = vadd.f32 %v2224_v38, %v561_v31  ;;  %v2070_v12 = vld [vmem:[#allocation5 + $0x20] ss:$8 sm:$0xf] }
 0x115   : > { %v2056_v19 = vmul.f32 %v1041_v63, %v2230_v57  ;;  %v965_v20 = vrot.slane %v940_v62, %v1643_v35  ;;  %v1003_v9 = vrot.slane %v982_v58, %v1641_v34  ;;  %v1007_v23 = vrot.slane %v982_v58, %v1643_v35 }
 0x116   : > { %v560_v42 = vadd.f32 %v556_v3, %v492_v5  ;;  %v986_v8 = vpop.permute.xlu1 %985  ;;  %v562_v0 = vadd.f32 %v558_v53, %v494_v39  ;;  %v563_v18 = vadd.f32 %v559_v56, %v495_v2  ;;  %v984_v28 = vpop.permute.xlu0 %983  ;;  %v1011_v5 = vrot.slane %v982_v58, %v1645_v36 }
 0x117   : > { %v952_v7 = vsel %vm345_vm3, %v2000_v30, %v1995_v37  ;;  %v950_v17 = vsel %vm345_vm3, %v1993_v52, %v2003_v26  ;;  %v653_v3 = vrot.slane %v624_v40, %v1645_v36  ;;  %v645_v4 = vrot.slane %v624_v40, %v1641_v34 }
 0x118   : > { %v619_v15 = vadd.f32 %v2225_v10, %v560_v42  ;;  %v622_v24 = vadd.f32 %v2226_v55, %v563_v18  ;;  %v2042_v59 = vadd.f32 %v2227_v44, %v562_v0  ;;  %v949_v16 = vsel %vm345_vm3, %v2003_v26, %v2000_v30 }
 0x119   : > { %v993_v39 = vsel %vm270_vm2, %v984_v28, %v986_v8  ;;  %v649_v53 = vrot.slane %v624_v40, %v1643_v35  ;;  %v1071_v42 = vrot.slane %v2070_v12, %v1639_v33  ;;  %v978_v14 = vadd.f32 %v974_v45, %v1987_v29 }
 0x11a   : > { %v990_v13 = vpop.permute.xlu1 %989  ;;  %v988_v50 = vpop.permute.xlu0 %987  ;;  %v977_v30 = vmul.f32 %v969_v32, %v952_v7  ;;  %v975_v26 = vmul.f32 %v961_v21, %v950_v17  ;;  %v976_v0 = vmul.f32 %v965_v20, %v949_v16  ;;  %v1017_v18 = vmul.f32 %v1003_v9, %v993_v39 }
 0x11b   : > { %v994_v61 = vsel %vm270_vm2, %v990_v13, %v984_v28  ;;  %v991_v52 = vsel %vm270_vm2, %v988_v50, %v990_v13  ;;  %v992_v48 = vsel %vm270_vm2, %v986_v8, %v988_v50  ;;  %v2231_v13 = vld [vmem:[#allocation18_spill] sm:$0xff]  ;;  %v1083_v50 = vrot.slane %v2070_v12, %v1645_v36 }
 0x11c   : > { %v1016_v56 = vmul.f32 %v999_v1, %v994_v61  ;;  %v1019_v55 = vmul.f32 %v1011_v5, %v991_v52  ;;  %v1018_v58 = vmul.f32 %v1007_v23, %v992_v48  ;;  %v1048_v40 = vmul.f32 %v1037_v22, %v2231_v13 }
 0x11d   : > { %v981_v51 = vadd.f32 %v977_v30, %v1989_v11  ;;  %v979_v57 = vadd.f32 %v975_v26, %v1985_v46  ;;  %v980_v32 = vadd.f32 %v976_v0, %v1991_v25  ;;  %v1079_v36 = vrot.slane %v2070_v12, %v1643_v35 }
 0x11e   : > { %v628_v31 = vpop.permute.xlu1 %627  ;;  %v626_v2 = vpop.permute.xlu0 %625  ;;  %v1020_v47 = vadd.f32 %v1016_v56, %v978_v14 }
 0x11f   : > { %v635_v37 = vsel %vm345_vm3, %v626_v2, %v628_v31  ;;  %v1023_v22 = vadd.f32 %v1019_v55, %v981_v51  ;;  %v1021_v46 = vadd.f32 %v1017_v18, %v979_v57  ;;  %v1022_v25 = vadd.f32 %v1018_v58, %v980_v32 }
 0x120   : > { %v658_v38 = vmul.f32 %v641_v60, %v635_v37 }
 0x121   : > { %v1051_v5 = vadd.f32 %v2046_v49, %v1021_v46 }
 0x122   : > { %v632_v62 = vpop.permute.xlu1 %631  ;;  %v662_v28 = vadd.f32 %v658_v38, %v619_v15  ;;  %v630_v10 = vpop.permute.xlu0 %629 }
 0x123   : > { %v636_v63 = vsel %vm345_vm3, %v632_v62, %v626_v2  ;;  %v633_v33 = vsel %vm345_vm3, %v630_v10, %v632_v62  ;;  %v634_v29 = vsel %vm345_vm3, %v628_v31, %v630_v10  ;;  %v1052_v31 = vadd.f32 %v1048_v40, %v1022_v25 }
 0x124   : > { %v661_v44 = vmul.f32 %v653_v3, %v636_v63  ;;  %666 = vst [vmem:[%s2106_s4] sm:$0xff] %v662_v28  ;;  %v659_v8 = vmul.f32 %v645_v4, %v634_v29  ;;  %v660_v15 = vmul.f32 %v649_v53, %v633_v33 }
 0x126   : > { %v665_v43 = vadd.f32 %v661_v44, %v622_v24  ;;  %v1058_v41 = vpop.permute.xlu1 %1057  ;;  %v663_v21 = vadd.f32 %v659_v8, %v2031_v6  ;;  %v664_v20 = vadd.f32 %v660_v15, %v2042_v59  ;;  %v1056_v9 = vpop.permute.xlu0 %1055  ;;  %v1075_v24 = vrot.slane %v2070_v12, %v1641_v34 }
 0x127   : > { %v1065_v11 = vsel %vm345_vm3, %v1056_v9, %v1058_v41  ;;  %v1050_v6 = vadd.f32 %v2049_v54, %v1020_v47  ;;  %v1053_v34 = vadd.f32 %v2056_v19, %v1023_v22 }
 0x128   : > { %669 = vst [vmem:[%s2106_s4 + $0x18] sm:$0xff] %v665_v43  ;;  %667 = vst [vmem:[%s2106_s4 + $0x8] sm:$0xff] %v663_v21  ;;  %v1088_v59 = vmul.f32 %v1071_v42, %v1065_v11 }
 0x129   : > { %668 = vst [vmem:[%s2106_s4 + $0x10] sm:$0xff] %v664_v20 }
 0x12a   : > { %v1062_v1 = vpop.permute.xlu1 %1061  ;;  %v1092_v60 = vadd.f32 %v1088_v59, %v1050_v6  ;;  %v1060_v61 = vpop.permute.xlu0 %1059 }
 0x12b   : > { %v1066_v45 = vsel %vm345_vm3, %v1062_v1, %v1056_v9  ;;  %v1063_v23 = vsel %vm345_vm3, %v1060_v61, %v1062_v1  ;;  %v1064_v54 = vsel %vm345_vm3, %v1058_v41, %v1060_v61 }
 0x12c   : > { %v1091_v35 = vmul.f32 %v1083_v50, %v1066_v45  ;;  %1096 = vst [vmem:[%s2106_s4 + $0x20] sm:$0xff] %v1092_v60  ;;  %v1089_v12 = vmul.f32 %v1075_v24, %v1064_v54  ;;  %v1090_v7 = vmul.f32 %v1079_v36, %v1063_v23 }
 0x12e   : > { %v1095_v17 = vadd.f32 %v1091_v35, %v1053_v34  ;;  %v1093_v19 = vadd.f32 %v1089_v12, %v1051_v5  ;;  %v1094_v2 = vadd.f32 %v1090_v7, %v1052_v31 }
 0x130   : > { %1099 = vst [vmem:[%s2106_s4 + $0x38] sm:$0xff] %v1095_v17  ;;  %1097 = vst [vmem:[%s2106_s4 + $0x28] sm:$0xff] %v1093_v19 }
 0x131   : > { %1098 = vst [vmem:[%s2106_s4 + $0x30] sm:$0xff] %v1094_v2 }
 0x132   : > { %1348 = shalt.err (!%p1345_p7)
}
 0x133   : > { %s1349_s7 = scalar_lea.hbm %s2141_s27, 1024  ;;  %s1353_s20 = scalar_lea.hbm %s2194_s3, 2048 }
 0x134   : > { %p1350_p9 = scmp.ne.s32.totalorder %s2141_s27, %s1349_s7  ;;  %p1354_p5 = scmp.lt.u32.totalorder %s2141_s27, %s2194_s3 }
 0x135   : > { %p1355_p11 = scmp.lt.u32.totalorder %s1353_s20, %s1349_s7  ;;  %p1357_p4 = scmp.lt.u32.totalorder %s1349_s7, %s2141_s27 }
 0x136   : > { %p1351_p1 = pnand %p1350_p9, %p1529_p12 }
 0x137   : > { %p1356_p2 = por %p1355_p11, %p1354_p5 }
 0x138   : > { %p1352_p0 = pneg %p1351_p1 }
 0x139   : > { %p1358_p6 = por %p1357_p4, %p1356_p2 }
 0x13b   : > { %p1359_p8 = pnand %p1358_p6, %p1352_p0 }
 0x13d   : > { %1362 = shalt.err (!%p1359_p8)
}
 0x13e   : > { %s1414_s4 = smov 512  }
 0x13f   : > { %1221 = dma.vmem_to_hbm [thread:$0]  (%p1529_p12), %s2143_s5, 1024, %s2141_s27, %s1101_s28, %s1414_s4, %s1414_s4, %s1411_s18  }
 0x140 PF: > { %s1129_s25 = sand.u32 1, %s1393_s12   ;;  %p2232_p10 = scmp.ne.s32.totalorder %s2203_s19, 0 }
 0x141   : > { %p2233_p13 = scmp.ge.s32.totalorder %s1405_s15, 2  ;;  %s1130_s16 = scalar_lea.sflag [#allocation4], %s1129_s25 }
 0x143   : > { %p1232_p3 = pnand %p2233_p13, %p2232_p10 }
 0x145   : > { %1388 = dma.done.wait (!%p1232_p3), %s1130_s16, 1024  }
 0x146   : > { %1390 = vsyncadd (!%p1232_p3), %s1130_s16, 4294966272  ;;  %p17_p7 = scmp.ge.s32.totalorder %s1491_s24, 4   ;;  %s2234_s12 = smov %s1397_s13 }
 0x147   : > { %s2235_s13 = smov %s1401_s14  ;;  %s2236_s14 = smov %s1525_s17 }
 0x148   : > { %s2237_s15 = smov %s1491_s24  ;;  %19 = sbr.rel (!%p17_p7) target bundleno = 6 (0x6), region = 89 }
 0x14f   :  { %1135 = vsyncpa [#allocation3], 1 }
 0x150   :  { %1137 = vsyncpa [#allocation3 + $0x1], 1 }
 0x151   :  { %1138 = vsyncpa [#allocation6], 1 }
 0x152   :  { %1139 = vsyncpa [#allocation4], 1 }
 0x153   :  { %1141 = vsyncpa [#allocation4 + $0x1], 1 }

</bundles_post_ra>
